<compile_context>
chip_gen: v5e
topology: v5e:2x2
jax: 0.10.0
libtpu: 0.0.40
codegen_flags: <defaults>
</compile_context>

<pallas_src>
import functools

import jax
import jax.numpy as jnp
import numpy as np
from jax.experimental import pallas as pl
from jax.experimental.pallas import tpu as pltpu

KERNEL_SIZES = (5, 9, 13)
LRELU_SLOPE = 0.1

# Rows of the additive boundary-mask input: 0.0 where the shifted read stays
# inside the image, -inf where it would cross a row/column boundary (or wrap
# around the flat H*W index).
_M_C_P1, _M_C_P2, _M_C_M1, _M_C_M2 = 0, 1, 2, 3   # column shifts +1, +2, -1, -2
_M_R_P1, _M_R_P2, _M_R_M1, _M_R_M2 = 4, 5, 6, 7   # row    shifts +1, +2, -1, -2


def _lrelu(x):
    return jnp.where(x > 0, x, LRELU_SLOPE * x)


@functools.lru_cache(maxsize=None)
def _roll_is_jnp_convention():
    """One-time calibration of pltpu.roll's rotation direction.

    Returns True iff pltpu.roll(x, s, axis)[i] == x[(i - s) % n], i.e. the
    jnp.roll convention.  Cached Python bool; called outside jit.
    """
    def probe(x_ref, o_ref):
        o_ref[...] = pltpu.roll(x_ref[...], 1, axis=1)

    x = jnp.broadcast_to(jnp.arange(128, dtype=jnp.float32), (8, 128))
    out = pl.pallas_call(
        probe, out_shape=jax.ShapeDtypeStruct((8, 128), jnp.float32))(x)
    return bool(out[0, 0] > 64.0)


@functools.lru_cache(maxsize=None)
def _boundary_planes(H, W):
    """(8, H*W) f32 additive planes (0 valid / -inf invalid) for shifted reads."""
    HW = H * W
    col = np.arange(HW) % W
    row = np.arange(HW) // W

    def plane(valid):
        return np.where(valid, 0.0, -np.inf)

    return np.stack([
        plane(col < W - 1),   # column +1
        plane(col < W - 2),   # column +2
        plane(col >= 1),      # column -1
        plane(col >= 2),      # column -2
        plane(row < H - 1),   # row +1
        plane(row < H - 2),   # row +2
        plane(row >= 1),      # row -1
        plane(row >= 2),      # row -2
    ]).astype(np.float32)


def _spp_kernel(x_ref, w1t_ref, b1_ref, w2t_ref, b2_ref, mask_ref, o_ref, *,
                W, roll_jnp):
    # x_ref   : (C1, H*W)   per-batch tile (batch dim squeezed), io dtype
    # w1t_ref : (C_, C1)    b1_ref: (C_, 1) f32
    # w2t_ref : (C2, 4*C_)  b2_ref: (C2, 1) f32
    # mask_ref: (8, H*W)    f32 additive 0/-inf boundary planes (resident)
    # o_ref   : (C2, H*W)   io dtype
    HW = x_ref.shape[1]
    C_ = w1t_ref.shape[0]

    def shift_amount(d):
        # Amount to pass to pltpu.roll so that result[i] == value[i + d] (mod HW).
        return (-d) % HW if roll_jnp else d % HW

    def smax(acc_val, v, d, mask_row):
        # max(acc_val, value shifted by d flat positions, -inf outside image)
        shifted = pltpu.roll(v, shift_amount(d), axis=1)          # XLU
        return jnp.maximum(acc_val, shifted + mask_ref[pl.ds(mask_row, 1), :])

    # ---- cv1: 1x1 conv (+ folded BN) as a matmul, bias, LeakyReLU -----------
    x = x_ref[...].astype(jnp.float32)
    y = jnp.dot(w1t_ref[...].astype(jnp.float32), x,
                preferred_element_type=jnp.float32)
    y = _lrelu(y + b1_ref[...])                                    # (C_, HW) f32

    w2t = w2t_ref[...].astype(jnp.float32)                         # (C2, 4*C_)

    # cv2 partial matmul for the identity branch, issued immediately so the MXU
    # overlaps the pooling cascade below (concat folded into partial dots).
    acc = jnp.dot(w2t[:, 0:C_], y, preferred_element_type=jnp.float32)

    # ---- p5 = 5x5 max pool (separable: columns within rows, then rows) ------
    r = smax(y, y, 1, _M_C_P1)
    r = smax(r, y, 2, _M_C_P2)
    r = smax(r, y, -1, _M_C_M1)
    r = smax(r, y, -2, _M_C_M2)
    p5 = smax(r, r, W, _M_R_P1)
    p5 = smax(p5, r, 2 * W, _M_R_P2)
    p5 = smax(p5, r, -W, _M_R_M1)
    p5 = smax(p5, r, -2 * W, _M_R_M2)
    acc = acc + jnp.dot(w2t[:, C_:2 * C_], p5,
                        preferred_element_type=jnp.float32)

    # ---- cascade: clipped k x k max -> clipped (k+4) x (k+4) max ------------
    def grow(p):
        t = smax(p, p, 2, _M_C_P2)
        t = smax(t, p, -2, _M_C_M2)
        q = smax(t, t, 2 * W, _M_R_P2)
        q = smax(q, t, -2 * W, _M_R_M2)
        return q

    p9 = grow(p5)
    acc = acc + jnp.dot(w2t[:, 2 * C_:3 * C_], p9,
                        preferred_element_type=jnp.float32)
    p13 = grow(p9)
    acc = acc + jnp.dot(w2t[:, 3 * C_:4 * C_], p13,
                        preferred_element_type=jnp.float32)

    # ---- cv2 bias + LeakyReLU, lane-dense store ------------------------------
    o_ref[...] = _lrelu(acc + b2_ref[...]).astype(o_ref.dtype)


def spp_pallas(x_nchw, w1, b1, w2, b2, *, io_dtype=None):
    """x_nchw: (N, C1, H, W) -> (N, C2, H, W) in `io_dtype` (default x dtype).

    Conv+BatchNorm of cv1/cv2 are assumed folded into (w, b) (inference form).
    `io_dtype=jnp.bfloat16` halves HBM traffic; pooling stays f32 in-kernel.
    """
    N, C1, H, W = x_nchw.shape
    C_ = w1.shape[1]
    C2 = w2.shape[1]
    HW = H * W
    if io_dtype is None:
        io_dtype = x_nchw.dtype

    x_flat = x_nchw.reshape(N, C1, HW).astype(io_dtype)   # free: NCHW is (C,H*W)-major
    w1t = jnp.transpose(w1).astype(io_dtype)              # (C_, C1)
    w2t = jnp.transpose(w2).astype(io_dtype)              # (C2, 4*C_)
    b1c = b1.reshape(C_, 1).astype(jnp.float32)
    b2c = b2.reshape(C2, 1).astype(jnp.float32)
    masks = jnp.asarray(_boundary_planes(H, W))            # (8, HW) f32, host-built

    kernel = functools.partial(_spp_kernel, W=W,
                               roll_jnp=_roll_is_jnp_convention())

    out_flat = pl.pallas_call(
        kernel,
        out_shape=jax.ShapeDtypeStruct((N, C2, HW), io_dtype),
        grid_spec=pltpu.PrefetchScalarGridSpec(
            num_scalar_prefetch=0,
            grid=(N,),
            in_specs=[
                pl.BlockSpec((None, C1, HW), lambda n: (n, 0, 0)),
                # Weights / biases / masks: constant index maps -> stay resident,
                # no per-step re-DMA.
                pl.BlockSpec((C_, C1), lambda n: (0, 0)),
                pl.BlockSpec((C_, 1), lambda n: (0, 0)),
                pl.BlockSpec((C2, 4 * C_), lambda n: (0, 0)),
                pl.BlockSpec((C2, 1), lambda n: (0, 0)),
                pl.BlockSpec((8, HW), lambda n: (0, 0)),
            ],
            out_specs=pl.BlockSpec((None, C2, HW), lambda n: (n, 0, 0)),
        ),
        compiler_params=pltpu.CompilerParams(
            dimension_semantics=("parallel",)),
    )(x_flat, w1t, b1c, w2t, b2c, masks)

    return out_flat.reshape(N, C2, H, W)


def spp_reference(x_nchw, w1, b1, w2, b2):
    """Pure-JAX reference with identical semantics (for validation)."""
    x = jnp.transpose(x_nchw, (0, 2, 3, 1))
    y = jnp.einsum('nhwc,cd->nhwd', x, w1) + b1.reshape(1, 1, 1, -1)
    y = _lrelu(y)
    pools = [y]
    for k in KERNEL_SIZES:
        p = k // 2
        pools.append(jax.lax.reduce_window(
            y, -jnp.inf, jax.lax.max,
            (1, k, k, 1), (1, 1, 1, 1),
            [(0, 0), (p, p), (p, p), (0, 0)]))
    feat = jnp.concatenate(pools, axis=-1)
    z = jnp.einsum('nhwc,cd->nhwd', feat, w2) + b2.reshape(1, 1, 1, -1)
    z = _lrelu(z)
    return jnp.transpose(z, (0, 3, 1, 2))


if __name__ == "__main__":
    # Module config: SPP(c1=4, c2=8, e=0.5) -> c_ = 2, cv2 in-channels = 8.
    N, C1, H, W = 2, 4, 16, 16
    C2 = 8
    C_ = int(C1 * 0.5)

    key = jax.random.PRNGKey(0)
    kx, k1, kb1, k2, kb2 = jax.random.split(key, 5)

    x = jax.random.normal(kx, (N, C1, H, W), dtype=jnp.float32)
    # Deterministic synthetic params; Conv+BatchNorm folded into (weight, bias).
    w1 = jax.random.normal(k1, (C1, C_), dtype=jnp.float32) * 0.5
    b1 = jax.random.normal(kb1, (C_,), dtype=jnp.float32) * 0.1
    w2 = jax.random.normal(k2, (C_ * (len(KERNEL_SIZES) + 1), C2),
                           dtype=jnp.float32) * 0.5
    b2 = jax.random.normal(kb2, (C2,), dtype=jnp.float32) * 0.1

    ref = jax.block_until_ready(spp_reference(x, w1, b1, w2, b2))

    # f32 everywhere (v5e-friendly default): tight check vs. the reference.
    out_f32 = jax.block_until_ready(spp_pallas(x, w1, b1, w2, b2))
    assert out_f32.shape == (N, C2, H, W), out_f32.shape
    np.testing.assert_allclose(np.asarray(out_f32), np.asarray(ref),
                               rtol=1e-3, atol=1e-3)

    # bf16 HBM I/O (halves memory traffic); pooling still f32 in-kernel.
    out_bf16 = jax.block_until_ready(
        spp_pallas(x, w1, b1, w2, b2, io_dtype=jnp.bfloat16))
    assert out_bf16.shape == (N, C2, H, W), out_bf16.shape
    np.testing.assert_allclose(np.asarray(out_bf16.astype(jnp.float32)),
                               np.asarray(ref), rtol=5e-2, atol=5e-2)

    print("KERNEL_OK")
</pallas_src>

<mosaic_0001>
module attributes {stable_mosaic.version = 11 : i64} {
  func.func @probe(%arg0: memref<8x128xf32, #tpu.memory_space<vmem>>, %arg1: memref<8x128xf32, #tpu.memory_space<vmem>>) attributes {dimension_semantics = [], scalar_prefetch = 0 : i64, scratch_operands = 0 : i64, tpu.core_type = #tpu.core_type<tc>} {
    %c0 = arith.constant 0 : index
    %c0_0 = arith.constant 0 : index
    %0 = vector.load %arg0[%c0, %c0_0] : memref<8x128xf32, #tpu.memory_space<vmem>>, vector<8x128xf32>
    %c1_i32 = arith.constant 1 : i32
    %1 = tpu.dynamic_rotate %0 by %c1_i32 dim 1 : vector<8x128xf32>, i32 -> vector<8x128xf32>
    %c0_1 = arith.constant 0 : index
    %c0_2 = arith.constant 0 : index
    %2 = vector.load %arg1[%c0_1, %c0_2] : memref<8x128xf32, #tpu.memory_space<vmem>>, vector<8x128xf32>
    tpu.vector_store %arg1[%c0_1, %c0_2], %1 {strides = array<i32>} : memref<8x128xf32, #tpu.memory_space<vmem>>, vector<8x128xf32>,
    return
  }
}

</mosaic_0001>

<bundles_post_ra>
// kernel: tpu_custom_call.1
= control target key start
LH: loop header
LB: loop body
LE: loop exit
PB: predicated region body
PF: predicated region fallthrough
CT: control target
= control target key end

     0   :  { %6 = vsyncpa [#allocation3], 0  ;;  %s118_s0 = inlined_call_operand.hbm [shape: f32[8,128], index: 0, kind: input, shape index: {}]   ;;  %s119_s1 = inlined_call_operand.hbm [shape: f32[8,128], index: 1, kind: output, shape index: {}]  }
   0x1   :  { %7 = vsyncpa [#allocation4], 0  ;;  %s13_s8 = sshll.u32 %s118_s0, 4  ;;  %s99_s9 = smov [#allocation2]   ;;  %s14_s8 = int_to_ptr.hbm [resolvable:$true] %s13_s8 }
   0x2   :  { %s15_s10 = sshll.u32 %s99_s9, 4  ;;  %s16_s10 = int_to_ptr.vmem [resolvable:$true] %s15_s10 }
   0x3   :  { %18 = dma.hbm_to_vmem [thread:$0]  %s14_s8, 128, %s16_s10, [#allocation3]  }
   0x4   :  { %95 = dma.done.wait [#allocation3], 128  }
   0x5   :  { %96 = vsyncadd [#allocation3], 4294967168  ;;  %v23_v0 = vld [vmem:[#allocation2] sm:$0xff]  ;;  %s100_s11 = smov 1   ;;  %s101_s12 = smov [#allocation5]  }
   0x6   :  { %24 = vrot.lane.b32.xlu0 %v23_v0, %s100_s11  ;;  %s32_s13 = sshll.u32 %s101_s12, 4  ;;  %s34_s16 = sshll.u32 %s119_s1, 4  ;;  %s33_s13 = int_to_ptr.vmem [resolvable:$true] %s32_s13  ;;  %s35_s16 = int_to_ptr.hbm [resolvable:$true] %s34_s16 }
  0x78   :  { %v25_v1 = vpop.permute.xlu0 %24 }
  0x79   :  { %26 = vst [vmem:[#allocation5] sm:$0xff] %v25_v1 }
  0x7a   :  { %37 = dma.vmem_to_hbm [thread:$0]  %s33_s13, 128, %s35_s16, [#allocation4]  }
  0x7b   :  { %97 = dma.done.wait [#allocation4], 128  }
  0x7c   :  { %98 = vsyncadd [#allocation4], 4294967168 }
  0x7d   :  { %42 = vsyncpa [#allocation3], 1 }
  0x7e   :  { %43 = vsyncpa [#allocation4], 1 }

</bundles_post_ra>
